<compile_context>
chip_gen: v7x
topology: tpu7x:2x2x1
jax: 0.10.0
libtpu: 0.0.40
codegen_flags: <defaults>
</compile_context>

<pallas_src>
import functools

import jax
import jax.numpy as jnp
from jax.experimental import pallas as pl
from jax.experimental.pallas import tpu as pltpu


def _round_up(n, m):
    return ((n + m - 1) // m) * m


def mlp_kernel(x_ref, w1_ref, b1_ref, w2_ref, b2_ref, w3_ref, b3_ref, o_ref):
    # Layer 1: Linear + ReLU.  x arrives f32; cast to bf16 here (in-kernel VPU
    # cast, no extra HBM pass) and accumulate in f32 on the MXU.
    x = x_ref[...].astype(jnp.bfloat16)
    h1 = jnp.dot(x, w1_ref[...], preferred_element_type=jnp.float32)
    h1 = jnp.maximum(h1 + b1_ref[...], 0.0)

    # Layer 2: Linear + ReLU.
    h2 = jnp.dot(h1.astype(jnp.bfloat16), w2_ref[...],
                 preferred_element_type=jnp.float32)
    h2 = jnp.maximum(h2 + b2_ref[...], 0.0)

    # Layer 3: Linear + Tanh (tanh lands on the EUP slot, stays f32).
    h3 = jnp.dot(h2.astype(jnp.bfloat16), w3_ref[...],
                 preferred_element_type=jnp.float32)
    o_ref[...] = jnp.tanh(h3 + b3_ref[...]).astype(o_ref.dtype)


def prepare_params(w1, b1, w2, b2, w3, b3):
    """One-time prep (NOT in the per-call path): lane-dense pad + bf16 cast.

    Output-feature dims (hidden / output) are zero-padded to multiples of 128
    so weight loads and the output store are full, unmasked vregs.  The
    padding is exact: padded weight columns and bias entries are 0, so
    relu(0)=0 propagates and the extra tanh columns are sliced off in the
    wrapper.  Contraction (K) dims are left unpadded so x never needs feature
    padding.  Weights -> bf16 (MXU operands), biases stay f32.
    """
    in_f, hid = w1.shape
    out_f = w3.shape[1]
    hp = _round_up(hid, 128)
    op = _round_up(out_f, 128)

    bf16, f32 = jnp.bfloat16, jnp.float32
    w1_p = jnp.pad(w1, ((0, 0), (0, hp - hid))).astype(bf16)
    w2_p = jnp.pad(w2, ((0, hp - hid), (0, hp - hid))).astype(bf16)
    w3_p = jnp.pad(w3, ((0, hp - hid), (0, op - out_f))).astype(bf16)
    b1_p = jnp.pad(b1.reshape(1, -1), ((0, 0), (0, hp - hid))).astype(f32)
    b2_p = jnp.pad(b2.reshape(1, -1), ((0, 0), (0, hp - hid))).astype(f32)
    b3_p = jnp.pad(b3.reshape(1, -1), ((0, 0), (0, op - out_f))).astype(f32)
    return (w1_p, b1_p, w2_p, b2_p, w3_p, b3_p), out_f


def _resident(shape):
    # Weights/biases pinned in VMEM across the whole grid (constant block
    # index); single-buffered since they never change between grid steps.
    return pl.BlockSpec(shape, lambda i: (0, 0), pipeline_mode=pl.Buffered(1))


@functools.partial(
    jax.jit, static_argnames=("out_features", "block_batch", "out_dtype"))
def mlp_forward(x, w1_p, b1_p, w2_p, b2_p, w3_p, b3_p, *,
                out_features, block_batch=512, out_dtype=jnp.float32):
    batch, in_f = x.shape
    kp, hp = w1_p.shape
    op = w3_p.shape[1]
    out_bytes = jnp.dtype(out_dtype).itemsize

    # Batch tile: multiple of 16 (bf16 vreg packs [16,128]); capped at
    # block_batch (512 default keeps the v6e 2x256x256 MXU full, 128-aligned
    # for v5e's 4x128x128).  v7x: once the batch fills two 256-row tiles,
    # split so the parallel grid axis has >=2 steps for both TensorCores
    # (harmless on single-TC v5e/v6e).
    bp16 = _round_up(batch, 16)
    if bp16 <= block_batch:
        tb = bp16
        if bp16 >= 512:
            tb = _round_up(pl.cdiv(bp16, 2), 256)
    else:
        tb = block_batch
    bp = _round_up(batch, tb)
    grid = (bp // tb,)

    # Only zero-pad the batch dim of x when it is not a multiple of the tile
    # (padded rows are exact zeros and are sliced off).  No feature padding
    # and no bf16 cast of x here.
    x_p = x if bp == batch else jnp.pad(x, ((0, bp - batch), (0, 0)))

    in_specs = [
        pl.BlockSpec((tb, in_f), lambda i: (i, 0)),   # x (f32, cast in kernel)
        _resident((kp, hp)),                          # w1 (bf16)
        _resident((1, hp)),                           # b1 (f32)
        _resident((hp, hp)),                          # w2 (bf16)
        _resident((1, hp)),                           # b2 (f32)
        _resident((hp, op)),                          # w3 (bf16)
        _resident((1, op)),                           # b3 (f32)
    ]
    out_spec = pl.BlockSpec((tb, op), lambda i: (i, 0))

    # VMEM budget: single-buffered weights/biases + double-buffered x/out
    # tiles + f32 intermediates.  Raise the scoped VMEM limit explicitly
    # (defaults 16/32 MiB reject big tiles long before physical capacity),
    # but keep it <= v7x's 64 MiB physical VMEM.
    weight_vmem = 2 * (kp * hp + hp * hp + hp * op) + 4 * (2 * hp + op)
    io_vmem = 2 * tb * in_f * 4 + 2 * tb * op * out_bytes
    body_vmem = tb * (2 * hp + op) * 4
    vmem_needed = weight_vmem + io_vmem + body_vmem
    vmem_limit = int(min(max(2 * vmem_needed, 32 * 1024 * 1024),
                         64 * 1024 * 1024))
    # TODO(synk): if single-buffered weights alone exceed ~40 MiB (very large
    # hidden on v7x), stop pinning whole weights and tile the hidden/K dims
    # with a reduction grid axis + f32 accumulator scratch (pl.when
    # init/finalize) instead.

    flops = 2 * bp * (in_f * hp + hp * hp + hp * op)
    bytes_accessed = (
        bp * in_f * 4                                   # x (f32)
        + (kp * hp + hp * hp + hp * op) * 2             # weights (bf16)
        + (2 * hp + op) * 4                             # biases (f32)
        + bp * op * out_bytes                           # output
    )

    out_padded = pl.pallas_call(
        mlp_kernel,
        out_shape=jax.ShapeDtypeStruct((bp, op), out_dtype),
        grid_spec=pl.GridSpec(grid=grid, in_specs=in_specs,
                              out_specs=out_spec),
        compiler_params=pltpu.CompilerParams(
            dimension_semantics=("parallel",),   # v7x: shard batch tiles
            vmem_limit_bytes=vmem_limit,
        ),
        cost_estimate=pl.CostEstimate(
            flops=flops,
            transcendentals=bp * op,             # tanh
            bytes_accessed=bytes_accessed,
        ),
    )(x_p, w1_p, b1_p, w2_p, b2_p, w3_p, b3_p)

    # Slice off batch / feature padding.
    return out_padded[:batch, :out_features]


def init_params(key, input_size, hidden_size, output_size):
    # Deterministic init mimicking nn.Linear's U(-1/sqrt(fan_in), 1/sqrt(fan_in)).
    ks = jax.random.split(key, 6)

    def linear(kw, kb, fan_in, fan_out):
        bound = 1.0 / jnp.sqrt(fan_in)
        w = jax.random.uniform(kw, (fan_in, fan_out), jnp.float32, -bound, bound)
        b = jax.random.uniform(kb, (fan_out,), jnp.float32, -bound, bound)
        return w, b

    w1, b1 = linear(ks[0], ks[1], input_size, hidden_size)
    w2, b2 = linear(ks[2], ks[3], hidden_size, hidden_size)
    w3, b3 = linear(ks[4], ks[5], hidden_size, output_size)
    return w1, b1, w2, b2, w3, b3


if __name__ == "__main__":
    input_size, hidden_size, output_size = 32, 64, 16
    batch = 8

    key = jax.random.PRNGKey(0)
    k_x, k_p = jax.random.split(key)

    x = jax.random.normal(k_x, (batch, input_size), jnp.float32)
    w1, b1, w2, b2, w3, b3 = init_params(k_p, input_size, hidden_size,
                                         output_size)

    # One-time weight prep (pad + bf16 cast) outside the per-call path.
    (w1_p, b1_p, w2_p, b2_p, w3_p, b3_p), out_f = prepare_params(
        w1, b1, w2, b2, w3, b3)

    out = mlp_forward(x, w1_p, b1_p, w2_p, b2_p, w3_p, b3_p,
                      out_features=out_f)
    out = jax.block_until_ready(out)

    # Pure-f32 JAX reference (kernel uses bf16 MXU operands -> loose tol).
    h = jnp.maximum(x @ w1 + b1, 0.0)
    h = jnp.maximum(h @ w2 + b2, 0.0)
    ref = jnp.tanh(h @ w3 + b3)

    assert out.shape == (batch, output_size)
    assert jnp.allclose(out, ref, atol=3e-2, rtol=3e-2), (
        float(jnp.max(jnp.abs(out - ref))))

    print("KERNEL_OK")
</pallas_src>

<mosaic_0001>
module attributes {stable_mosaic.version = 11 : i64} {
  func.func @mlp_kernel(%arg0: i32, %arg1: memref<16x32xf32, #tpu.memory_space<vmem>>, %arg2: memref<32x128xbf16, #tpu.memory_space<vmem>>, %arg3: memref<1x128xf32, #tpu.memory_space<vmem>>, %arg4: memref<128x128xbf16, #tpu.memory_space<vmem>>, %arg5: memref<1x128xf32, #tpu.memory_space<vmem>>, %arg6: memref<128x128xbf16, #tpu.memory_space<vmem>>, %arg7: memref<1x128xf32, #tpu.memory_space<vmem>>, %arg8: memref<16x128xf32, #tpu.memory_space<vmem>>) attributes {dimension_semantics = [#tpu.dimension_semantics<parallel>], iteration_bounds = array<i64: 1>, scalar_prefetch = 0 : i64, scratch_operands = 0 : i64, tpu.core_type = #tpu.core_type<tc>, window_params = [{transform_indices = @transform_0, window_bounds = array<i64: 16, 32>}, {pipeline_mode = #tpu.pipeline_mode<synchronous>, transform_indices = @transform_1, window_bounds = array<i64: 32, 128>}, {pipeline_mode = #tpu.pipeline_mode<synchronous>, transform_indices = @transform_2, window_bounds = array<i64: 1, 128>}, {pipeline_mode = #tpu.pipeline_mode<synchronous>, transform_indices = @transform_3, window_bounds = array<i64: 128, 128>}, {pipeline_mode = #tpu.pipeline_mode<synchronous>, transform_indices = @transform_4, window_bounds = array<i64: 1, 128>}, {pipeline_mode = #tpu.pipeline_mode<synchronous>, transform_indices = @transform_5, window_bounds = array<i64: 128, 128>}, {pipeline_mode = #tpu.pipeline_mode<synchronous>, transform_indices = @transform_6, window_bounds = array<i64: 1, 128>}, {transform_indices = @transform_7, window_bounds = array<i64: 16, 128>}]} {
    %c0 = arith.constant 0 : index
    %c0_0 = arith.constant 0 : index
    %0 = vector.load %arg1[%c0, %c0_0] : memref<16x32xf32, #tpu.memory_space<vmem>>, vector<16x32xf32>
    %1 = arith.truncf %0 : vector<16x32xf32> to vector<16x32xbf16>
    %c0_1 = arith.constant 0 : index
    %c0_2 = arith.constant 0 : index
    %2 = vector.load %arg2[%c0_1, %c0_2] : memref<32x128xbf16, #tpu.memory_space<vmem>>, vector<32x128xbf16>
    %cst = arith.constant dense<0.000000e+00> : vector<16x128xf32>
    %3 = tpu.matmul %1, %2, %cst {dimension_numbers = #tpu.dot_dimension_numbers<[1], [0], [0], [1], [0, 0, 1, 1], [], []>} : vector<16x32xbf16>, vector<32x128xbf16>, vector<16x128xf32> -> vector<16x128xf32>
    %c0_3 = arith.constant 0 : index
    %c0_4 = arith.constant 0 : index
    %4 = vector.load %arg3[%c0_3, %c0_4] : memref<1x128xf32, #tpu.memory_space<vmem>>, vector<1x128xf32>
    %5 = vector.broadcast %4 : vector<1x128xf32> to vector<16x128xf32>
    %6 = arith.addf %3, %5 : vector<16x128xf32>
    %cst_5 = arith.constant 0.000000e+00 : f32
    %7 = vector.broadcast %cst_5 : f32 to vector<16x128xf32>
    %8 = arith.maximumf %6, %7 : vector<16x128xf32>
    %9 = arith.truncf %8 : vector<16x128xf32> to vector<16x128xbf16>
    %c0_6 = arith.constant 0 : index
    %c0_7 = arith.constant 0 : index
    %10 = vector.load %arg4[%c0_6, %c0_7] : memref<128x128xbf16, #tpu.memory_space<vmem>>, vector<128x128xbf16>
    %cst_8 = arith.constant dense<0.000000e+00> : vector<16x128xf32>
    %11 = tpu.matmul %9, %10, %cst_8 {dimension_numbers = #tpu.dot_dimension_numbers<[1], [0], [0], [1], [0, 0, 1, 1], [], []>} : vector<16x128xbf16>, vector<128x128xbf16>, vector<16x128xf32> -> vector<16x128xf32>
    %c0_9 = arith.constant 0 : index
    %c0_10 = arith.constant 0 : index
    %12 = vector.load %arg5[%c0_9, %c0_10] : memref<1x128xf32, #tpu.memory_space<vmem>>, vector<1x128xf32>
    %13 = vector.broadcast %12 : vector<1x128xf32> to vector<16x128xf32>
    %14 = arith.addf %11, %13 : vector<16x128xf32>
    %cst_11 = arith.constant 0.000000e+00 : f32
    %15 = vector.broadcast %cst_11 : f32 to vector<16x128xf32>
    %16 = arith.maximumf %14, %15 : vector<16x128xf32>
    %17 = arith.truncf %16 : vector<16x128xf32> to vector<16x128xbf16>
    %c0_12 = arith.constant 0 : index
    %c0_13 = arith.constant 0 : index
    %18 = vector.load %arg6[%c0_12, %c0_13] : memref<128x128xbf16, #tpu.memory_space<vmem>>, vector<128x128xbf16>
    %cst_14 = arith.constant dense<0.000000e+00> : vector<16x128xf32>
    %19 = tpu.matmul %17, %18, %cst_14 {dimension_numbers = #tpu.dot_dimension_numbers<[1], [0], [0], [1], [0, 0, 1, 1], [], []>} : vector<16x128xbf16>, vector<128x128xbf16>, vector<16x128xf32> -> vector<16x128xf32>
    %c0_15 = arith.constant 0 : index
    %c0_16 = arith.constant 0 : index
    %20 = vector.load %arg7[%c0_15, %c0_16] : memref<1x128xf32, #tpu.memory_space<vmem>>, vector<1x128xf32>
    %21 = vector.broadcast %20 : vector<1x128xf32> to vector<16x128xf32>
    %22 = arith.addf %19, %21 : vector<16x128xf32>
    %23 = math.tanh %22 : vector<16x128xf32>
    %c0_17 = arith.constant 0 : index
    %c0_18 = arith.constant 0 : index
    %24 = vector.load %arg8[%c0_17, %c0_18] : memref<16x128xf32, #tpu.memory_space<vmem>>, vector<16x128xf32>
    tpu.vector_store %arg8[%c0_17, %c0_18], %23 {strides = array<i32>} : memref<16x128xf32, #tpu.memory_space<vmem>>, vector<16x128xf32>,
    return
  }
  func.func @transform_0(%arg0: i32) -> (i32, i32) {
    %c0_i32 = arith.constant 0 : i32
    %c0_i32_0 = arith.constant 0 : i32
    return %arg0, %c0_i32 : i32, i32
  }
  func.func @transform_1(%arg0: i32) -> (i32, i32) {
    %c0_i32 = arith.constant 0 : i32
    %c0_i32_0 = arith.constant 0 : i32
    %c0_i32_1 = arith.constant 0 : i32
    return %c0_i32, %c0_i32_0 : i32, i32
  }
  func.func @transform_2(%arg0: i32) -> (i32, i32) {
    %c0_i32 = arith.constant 0 : i32
    %c0_i32_0 = arith.constant 0 : i32
    %c0_i32_1 = arith.constant 0 : i32
    return %c0_i32, %c0_i32_0 : i32, i32
  }
  func.func @transform_3(%arg0: i32) -> (i32, i32) {
    %c0_i32 = arith.constant 0 : i32
    %c0_i32_0 = arith.constant 0 : i32
    %c0_i32_1 = arith.constant 0 : i32
    return %c0_i32, %c0_i32_0 : i32, i32
  }
  func.func @transform_4(%arg0: i32) -> (i32, i32) {
    %c0_i32 = arith.constant 0 : i32
    %c0_i32_0 = arith.constant 0 : i32
    %c0_i32_1 = arith.constant 0 : i32
    return %c0_i32, %c0_i32_0 : i32, i32
  }
  func.func @transform_5(%arg0: i32) -> (i32, i32) {
    %c0_i32 = arith.constant 0 : i32
    %c0_i32_0 = arith.constant 0 : i32
    %c0_i32_1 = arith.constant 0 : i32
    return %c0_i32, %c0_i32_0 : i32, i32
  }
  func.func @transform_6(%arg0: i32) -> (i32, i32) {
    %c0_i32 = arith.constant 0 : i32
    %c0_i32_0 = arith.constant 0 : i32
    %c0_i32_1 = arith.constant 0 : i32
    return %c0_i32, %c0_i32_0 : i32, i32
  }
  func.func @transform_7(%arg0: i32) -> (i32, i32) {
    %c0_i32 = arith.constant 0 : i32
    %c0_i32_0 = arith.constant 0 : i32
    return %arg0, %c0_i32 : i32, i32
  }
}

</mosaic_0001>

<bundles_post_ra>
// kernel: mlp_forward.1
= control target key start
LH: loop header
LB: loop body
LE: loop exit
PB: predicated region body
PF: predicated region fallthrough
CT: control target
= control target key end

     0   :  { %12 = vsyncpa [#allocation3], 0  ;;  %s654_s0 = inlined_call_operand.vmem [shape: f32[16,32], index: 0, kind: input, shape index: {}]   ;;  %s655_s1 = inlined_call_operand.vmem [shape: bf16[32,128], index: 1, kind: input, shape index: {}]   ;;  %s656_s2 = inlined_call_operand.vmem [shape: f32[1,128], index: 2, kind: input, shape index: {}]   ;;  %s657_s3 = inlined_call_operand.hbm [shape: bf16[128,128], index: 3, kind: input, shape index: {}]   ;;  %s658_s4 = inlined_call_operand.vmem [shape: f32[1,128], index: 4, kind: input, shape index: {}]   ;;  %s659_s5 = inlined_call_operand.hbm [shape: bf16[128,128], index: 5, kind: input, shape index: {}]   ;;  %s660_s6 = inlined_call_operand.vmem [shape: f32[1,128], index: 6, kind: input, shape index: {}]   ;;  %s661_s7 = inlined_call_operand.vmem [shape: f32[16,128], index: 7, kind: output, shape index: {}]  }
   0x1   :  { %13 = vsyncpa [#allocation5], 0  ;;  %s533_s24 = smov [#allocation2]   ;;  %s485_s28 = scalar_lea.hbm %s657_s3, 1024 }
   0x2   :  { %s25_s25 = sshll.u32 %s533_s24, 4  ;;  %p486_p0 = scmp.ne.s32.totalorder %s657_s3, %s485_s28  ;;  %s26_s25 = int_to_ptr.vmem [resolvable:$true] %s25_s25 }
   0x3   :  { %p489_p1 = scmp.lt.u32.totalorder %s485_s28, %s657_s3 }
   0x5   :  { %p491_p2 = pnand %p489_p1, %p486_p0 }
   0x7   :  { %494 = shalt.err (!%p491_p2)
}
   0x8   :  { %s495_s10 = scalar_lea.vmem %s26_s25, 1024  ;;  %p500_p4 = scmp.lt.s32.totalorder %s26_s25, %s26_s25 }
   0x9   :  { %p496_p3 = scmp.ne.s32.totalorder %s26_s25, %s495_s10  ;;  %p501_p5 = scmp.lt.s32.totalorder %s495_s10, %s495_s10 }
   0xb   :  { %p502_p6 = por %p501_p5, %p500_p4 }
   0xd   :  { %p503_p7 = pnand %p502_p6, %p496_p3 }
   0xf   :  { %506 = shalt.err (!%p503_p7)
}
  0x10   :  { %s534_s11 = smov 64   ;;  %s535_s12 = smov 4  }
  0x11   :  { %31 = dma.hbm_to_vmem [thread:$0]  %s657_s3, 1024, %s26_s25, [#allocation3], %s534_s11, %s534_s11, %s535_s12  }
  0x12   :  { %s536_s15 = smov [#allocation4]   ;;  %s507_s19 = scalar_lea.hbm %s659_s5, 1024 }
  0x13   :  { %s39_s16 = sshll.u32 %s536_s15, 4  ;;  %p508_p8 = scmp.ne.s32.totalorder %s659_s5, %s507_s19  ;;  %s40_s16 = int_to_ptr.vmem [resolvable:$true] %s39_s16 }
  0x14   :  { %p511_p9 = scmp.lt.u32.totalorder %s507_s19, %s659_s5 }
  0x16   :  { %p513_p10 = pnand %p511_p9, %p508_p8 }
  0x18   :  { %516 = shalt.err (!%p513_p10)
}
  0x19   :  { %s517_s24 = scalar_lea.vmem %s40_s16, 1024  ;;  %p522_p12 = scmp.lt.s32.totalorder %s40_s16, %s40_s16 }
  0x1a   :  { %p518_p11 = scmp.ne.s32.totalorder %s40_s16, %s517_s24  ;;  %p523_p13 = scmp.lt.s32.totalorder %s517_s24, %s517_s24 }
  0x1c   :  { %p524_p0 = por %p523_p13, %p522_p12 }
  0x1e   :  { %p525_p1 = pnand %p524_p0, %p518_p11 }
  0x20   :  { %528 = shalt.err (!%p525_p1)
}
  0x21   :  { %45 = dma.hbm_to_vmem [thread:$0]  %s659_s5, 1024, %s40_s16, [#allocation5], %s534_s11, %s534_s11, %s535_s12  }
  0x22   :  { %529 = dma.done.wait [#allocation3], 1024  }
  0x23   :  { %530 = vsyncadd [#allocation3], 4294966272 }
  0x24   :  { %531 = dma.done.wait [#allocation5], 1024  }
  0x25   :  { %532 = vsyncadd [#allocation5], 4294966272  ;;  %v537_v0 = vmov 0.0   ;;  %vm538_vm0 = vmmov 0   ;;  %v463_v1 = vld [vmem:[%s655_s1] sm:$0xff]   ;;  %v464_v2 = vld [vmem:[%s655_s1 + $0x8] sm:$0xff]  }
  0x26   :  { %409 = vmatprep.subr.bf16.mxu0 %v537_v0  ;;  %413 = vmatprep.mubr.msk.bf16.mxu0 %vm538_vm0, %v537_v0  ;;  %v55_v3 = vld [vmem:[%s654_s0] sm:$0xff]  ;;  %v56_v4 = vld [vmem:[%s654_s0 + $0x8] sm:$0xff]  ;;  %vm81_vm1 = vcmask 261120   ;;  %v467_v8 = vld [vmem:[#allocation2 + $0x10] sm:$0xff]  }
  0x27   :  { %417 = vmatprep.subr.bf16.mxu1 %v537_v0  ;;  %433 = vmatprep.mubr.msk.bf16.mxu1 %vm538_vm0, %v537_v0  ;;  %v465_v5 = vld [vmem:[#allocation2] sm:$0xff]   ;;  %v57_v6 = vpack.c.bf16 %v56_v4, %v55_v3  ;;  %v466_v7 = vld [vmem:[#allocation2 + $0x8] sm:$0xff]   ;;  %v468_v9 = vld [vmem:[#allocation2 + $0x18] sm:$0xff]  }
  0x28   :  { %410 = vmatpush3.bf16.msra.mxu0 %v463_v1  ;;  %418 = vmatpush3.bf16.msra.mxu1 %v465_v5  ;;  %v469_v10 = vld [vmem:[#allocation2 + $0x20] sm:$0xff]   ;;  %v470_v11 = vld [vmem:[#allocation2 + $0x28] sm:$0xff]   ;;  %v471_v12 = vld [vmem:[#allocation2 + $0x30] sm:$0xff]  }
  0x29   :  { %411 = vmatprep.subr.bf16.mxu0 %v537_v0  ;;  %419 = vmatprep.subr.bf16.mxu1 %v537_v0  ;;  %v472_v13 = vld [vmem:[#allocation2 + $0x38] sm:$0xff]   ;;  %v473_v14 = vld [vmem:[#allocation4] sm:$0xff]   ;;  %v474_v15 = vld [vmem:[#allocation4 + $0x8] sm:$0xff]  }
  0x2a   :  { %v475_v16 = vld [vmem:[#allocation4 + $0x10] sm:$0xff]   ;;  %v476_v17 = vld [vmem:[#allocation4 + $0x18] sm:$0xff]   ;;  %v477_v18 = vld [vmem:[#allocation4 + $0x20] sm:$0xff]  }
  0x2b   :  { %v478_v19 = vld [vmem:[#allocation4 + $0x28] sm:$0xff]   ;;  %v366_v20 = vld [vmem:[%s656_s2] ss:$0 sm:$0xff]  ;;  %v479_v30 = vld [vmem:[#allocation4 + $0x30] sm:$0xff]  }
  0x2c   :  { %412 = vmatpush3.bf16.msra.mxu0 %v464_v2  ;;  %420 = vmatpush3.bf16.msra.mxu1 %v466_v7  ;;  %v480_v31 = vld [vmem:[#allocation4 + $0x38] sm:$0xff]   ;;  %v370_v32 = vld [vmem:[%s658_s4] ss:$0 sm:$0xff] }
  0x2d   :  { %437 = vmatprep.subr.bf16.mxu0 %v537_v0  ;;  %421 = vmatprep.subr.bf16.mxu1 %v537_v0  ;;  %v379_v42 = vld [vmem:[%s660_s6] ss:$0 sm:$0xff] }
  0x2f   :  { %414 = vmatmul.mubr.msk.bf16.vlgmr.msra.gmra.mrb[0].mxu0 %vm81_vm1, %v57_v6 }
  0x30   :  { %453 = vmatprep.mubr.msk.bf16.mxu0 %vm538_vm0, %v537_v0  ;;  %422 = vmatpush3.bf16.msra.mxu1 %v467_v8 }
  0x31   :  { %423 = vmatprep.subr.bf16.mxu1 %v537_v0  ;;  %438 = vmatpush3.bf16.msra.mxu0 %v473_v14 }
  0x32   :  { %439 = vmatprep.subr.bf16.mxu0 %v537_v0 }
  0x34   :  { %424 = vmatpush3.bf16.msra.mxu1 %v468_v9 }
  0x35   :  { %425 = vmatprep.subr.bf16.mxu1 %v537_v0  ;;  %440 = vmatpush3.bf16.msra.mxu0 %v474_v15 }
  0x36   :  { %441 = vmatprep.subr.bf16.mxu0 %v537_v0 }
  0x38   :  { %426 = vmatpush3.bf16.msra.mxu1 %v469_v10 }
  0x39   :  { %427 = vmatprep.subr.bf16.mxu1 %v537_v0  ;;  %442 = vmatpush3.bf16.msra.mxu0 %v475_v16 }
  0x3a   :  { %443 = vmatprep.subr.bf16.mxu0 %v537_v0 }
  0x3c   :  { %428 = vmatpush3.bf16.msra.mxu1 %v470_v11 }
  0x3d   :  { %429 = vmatprep.subr.bf16.mxu1 %v537_v0  ;;  %444 = vmatpush3.bf16.msra.mxu0 %v476_v17 }
  0x3e   :  { %445 = vmatprep.subr.bf16.mxu0 %v537_v0 }
  0x40   :  { %430 = vmatpush3.bf16.msra.mxu1 %v471_v12 }
  0x41   :  { %431 = vmatprep.subr.bf16.mxu1 %v537_v0  ;;  %446 = vmatpush3.bf16.msra.mxu0 %v477_v18 }
  0x42   :  { %447 = vmatprep.subr.bf16.mxu0 %v537_v0 }
  0x44   :  { %432 = vmatpush3.bf16.msra.mxu1 %v472_v13 }
  0x45   :  { %448 = vmatpush3.bf16.msra.mxu0 %v478_v19 }
  0x46   :  { %449 = vmatprep.subr.bf16.mxu0 %v537_v0 }
  0x49   :  { %450 = vmatpush3.bf16.msra.mxu0 %v479_v30 }
  0x4a   :  { %451 = vmatprep.subr.bf16.mxu0 %v537_v0 }
  0x4d   :  { %452 = vmatpush3.bf16.msra.mxu0 %v480_v31 }
 0x102   :  { %v119_v21 = vpop.f32.mrb[0].mxu0 }
 0x103   :  { %v120_v22 = vadd.f32 %v366_v20, %v119_v21  ;;  %v415_v23 = vpop.f32.mrb[1].mxu0 }
 0x104   :  { %v122_v24 = vpop.f32.mrb[2].mxu0 }
 0x105   :  { %v123_v25 = vadd.f32 %v366_v20, %v122_v24  ;;  %v416_v26 = vpop.f32.mrb[3].mxu0  ;;  %v126_v27 = vmax.f32 %v120_v22, 0.0 }
 0x107   :  { %v127_v28 = vmax.f32 %v123_v25, 0.0 }
 0x109   :  { %v128_v29 = vpack.c.bf16 %v127_v28, %v126_v27 }
 0x10b   :  { %434 = vmatmul.mubr.bf16.vlgmr.msra.gmra.mrb[0].mxu1 %v128_v29 }
 0x1de   :  { %v234_v33 = vpop.f32.mrb[0].mxu1 }
 0x1df   :  { %v235_v34 = vadd.f32 %v370_v32, %v234_v33  ;;  %v435_v35 = vpop.f32.mrb[1].mxu1 }
 0x1e0   :  { %v237_v36 = vpop.f32.mrb[2].mxu1 }
 0x1e1   :  { %v238_v37 = vadd.f32 %v370_v32, %v237_v36  ;;  %v436_v38 = vpop.f32.mrb[3].mxu1  ;;  %v241_v39 = vmax.f32 %v235_v34, 0.0 }
 0x1e3   :  { %v242_v40 = vmax.f32 %v238_v37, 0.0 }
 0x1e5   :  { %v243_v41 = vpack.c.bf16 %v242_v40, %v241_v39 }
 0x1e7   :  { %454 = vmatmul.mubr.bf16.vlgmr.msra.gmra.mrb[4].mxu0 %v243_v41 }
 0x2ba   :  { %v349_v43 = vpop.f32.mrb[4].mxu0 }
 0x2bb   :  { %v350_v44 = vadd.f32 %v379_v42, %v349_v43  ;;  %v455_v45 = vpop.f32.mrb[5].mxu0 }
 0x2bc   :  { %v352_v46 = vpop.f32.mrb[6].mxu0 }
 0x2bd   :  { %481 = vtanh.f32 %v350_v44  ;;  %v353_v47 = vadd.f32 %v379_v42, %v352_v46  ;;  %v456_v48 = vpop.f32.mrb[7].mxu0 }
 0x2bf   :  { %483 = vtanh.f32 %v353_v47 }
 0x2c7   :  { %v482_v49 = vpop.eup %481 }
 0x2c8   :  { %358 = vst [vmem:[%s661_s7] sm:$0xff] %v482_v49 }
 0x2c9   :  { %v484_v50 = vpop.eup %483 }
 0x2ca   :  { %359 = vst [vmem:[%s661_s7 + $0x8] sm:$0xff] %v484_v50 }
 0x2cb   :  { %364 = vsyncpa [#allocation3], 1 }
 0x2cc   :  { %365 = vsyncpa [#allocation5], 1 }

</bundles_post_ra>
